<compile_context>
chip_gen: v6e
topology: v6e:2x2x1
jax: 0.10.0
libtpu: 0.0.40
codegen_flags: <defaults>
</compile_context>

<pallas_src>
import functools

import jax
import jax.numpy as jnp
from jax.experimental import pallas as pl
from jax.experimental.pallas import tpu as pltpu

H1, H2 = 200, 100
H1_PAD = 256    # hidden1: 200 -> 256 (lane multiple)
H2_PAD = 128    # hidden2: 100 -> 128 (lane multiple)
OUT_PAD = 128   # padded matmul width for layer 3; store is sliced to action_dim
MAX_TB = 2048   # batch tile; ~10-11 MiB working set at tb=2048 (all gens OK)
VMEM_LIMIT_BYTES = 32 * 1024 * 1024  # explicit scoped-VMEM limit (v5e default is 16 MiB)


def _round_up(x, m):
    return ((x + m - 1) // m) * m


def actor_kernel(x_ref, w1_ref, b1_ref, w2_ref, b2_ref, w3_ref, b3_ref, out_ref):
    # One batch tile per grid step; whole (padded) network fused.
    x = x_ref[...]
    h1 = jnp.dot(x, w1_ref[...], preferred_element_type=jnp.float32) + b1_ref[...]
    h1 = jnp.maximum(h1, 0.0)                                   # relu
    h2 = jnp.dot(h1, w2_ref[...], preferred_element_type=jnp.float32) + b2_ref[...]
    h2 = jnp.maximum(h2, 0.0)                                   # relu
    a = jnp.dot(h2, w3_ref[...], preferred_element_type=jnp.float32) + b3_ref[...]
    # Narrow (action_dim-wide) store directly; avoids a padded HBM write +
    # wrapper-side slice pass.
    adim = out_ref.shape[1]
    out_ref[...] = jnp.tanh(a[:, :adim]).astype(out_ref.dtype)


def prepare_params(params):
    """One-time prep (do NOT call per forward): transpose to [in, out] and
    zero-pad feature axes to lane (128) multiples. Zero padding is numerically
    inert: relu(0)=0 and padded rows/cols of the next weight are zero."""
    w1, b1 = params["W1"], params["b1"]    # [200, S], [200]
    w2, b2 = params["W2"], params["b2"]    # [100, 200], [100]
    w3, b3 = params["W3"], params["b3"]    # [A, 100],  [A]
    state_dim = w1.shape[1]
    action_dim = w3.shape[0]

    w1t = jnp.zeros((state_dim, H1_PAD), jnp.float32).at[:, :H1].set(w1.T)
    b1r = jnp.zeros((1, H1_PAD), jnp.float32).at[:, :H1].set(b1[None, :])
    w2t = jnp.zeros((H1_PAD, H2_PAD), jnp.float32).at[:H1, :H2].set(w2.T)
    b2r = jnp.zeros((1, H2_PAD), jnp.float32).at[:, :H2].set(b2[None, :])
    w3t = jnp.zeros((H2_PAD, OUT_PAD), jnp.float32).at[:H2, :action_dim].set(w3.T)
    b3r = jnp.zeros((1, OUT_PAD), jnp.float32).at[:, :action_dim].set(b3[None, :])

    prepped = (w1t, b1r, w2t, b2r, w3t, b3r)
    return jax.tree_util.tree_map(jax.device_put, prepped), action_dim


@functools.partial(jax.jit, static_argnames=("action_dim",))
def actor_forward(state, prepped, action_dim):
    """state: [n, state_dim] float32. prepped: output of prepare_params."""
    w1t, b1r, w2t, b2r, w3t, b3r = prepped
    n, state_dim = state.shape

    # Batch tile: big enough to amortize per-step pipeline overhead, but
    # capped at ceil(n/2) (rounded to 8) so moderate batches still produce
    # >= 2 grid steps for v7x's two TensorCores. x is deliberately NOT padded
    # to 128 lanes in the wrapper (that would add a full extra HBM pass); the
    # narrow strided x DMA hides under compute.
    tb = min(MAX_TB, _round_up((n + 1) // 2, 8))
    grid = (pl.cdiv(n, tb),)

    x_spec = pl.BlockSpec((tb, state_dim), lambda i: (i, 0))
    out_spec = pl.BlockSpec((tb, action_dim), lambda i: (i, 0))
    # Constant index_map -> weights/biases fetched once, VMEM-resident.
    resident = lambda shape: pl.BlockSpec(shape, lambda i: (0, 0))

    flops = 2 * n * (state_dim * H1_PAD + H1_PAD * H2_PAD + H2_PAD * OUT_PAD)
    weight_bytes = 4 * (w1t.size + b1r.size + w2t.size + b2r.size + w3t.size + b3r.size)
    bytes_accessed = weight_bytes + 4 * n * (state_dim + action_dim)

    return pl.pallas_call(
        actor_kernel,
        out_shape=jax.ShapeDtypeStruct((n, action_dim), jnp.float32),
        grid_spec=pltpu.PrefetchScalarGridSpec(
            num_scalar_prefetch=0,
            grid=grid,
            in_specs=[
                x_spec,
                resident(w1t.shape), resident(b1r.shape),
                resident(w2t.shape), resident(b2r.shape),
                resident(w3t.shape), resident(b3r.shape),
            ],
            out_specs=out_spec,
        ),
        compiler_params=pltpu.CompilerParams(
            dimension_semantics=("parallel",),      # v7x: shard batch tiles across 2 TCs
            vmem_limit_bytes=VMEM_LIMIT_BYTES,      # safe headroom for tb=2048 on v5e
        ),
        cost_estimate=pl.CostEstimate(
            flops=flops,
            transcendentals=n * OUT_PAD,
            bytes_accessed=bytes_accessed,
        ),
    )(state, w1t, b1r, w2t, b2r, w3t, b3r)


def init_params(key, state_dim, action_dim):
    # Deterministic synthetic init: normal(mean=0, std=0.2) for all layers.
    # TODO(synk): the reference's init_weights(self.fc4, ...) refers to a
    # non-existent layer (would raise in PyTorch); we init all layers here.
    ks = jax.random.split(key, 6)
    std = 0.2
    return {
        "W1": std * jax.random.normal(ks[0], (H1, state_dim), jnp.float32),
        "b1": std * jax.random.normal(ks[1], (H1,), jnp.float32),
        "W2": std * jax.random.normal(ks[2], (H2, H1), jnp.float32),
        "b2": std * jax.random.normal(ks[3], (H2,), jnp.float32),
        "W3": std * jax.random.normal(ks[4], (action_dim, H2), jnp.float32),
        "b3": std * jax.random.normal(ks[5], (action_dim,), jnp.float32),
    }


def reference_forward(state, params):
    h1 = jnp.maximum(state @ params["W1"].T + params["b1"], 0.0)
    h2 = jnp.maximum(h1 @ params["W2"].T + params["b2"], 0.0)
    return jnp.tanh(h2 @ params["W3"].T + params["b3"])


if __name__ == "__main__":
    key = jax.random.PRNGKey(0)
    state_dim, action_dim, batch = 8, 4, 2

    k_in, k_par = jax.random.split(key)
    state = jax.random.normal(k_in, (batch, state_dim), jnp.float32)
    params = init_params(k_par, state_dim, action_dim)

    prepped, adim = prepare_params(params)          # one-time prep, not per call
    action = actor_forward(state, prepped, adim)
    action = jax.block_until_ready(action)

    ref = reference_forward(state, params)
    assert action.shape == (batch, action_dim)
    assert jnp.allclose(action, ref, atol=1e-5, rtol=1e-5)

    print("KERNEL_OK")
</pallas_src>

<mosaic_0001>
module attributes {stable_mosaic.version = 11 : i64} {
  func.func @actor_kernel(%arg0: i32, %arg1: memref<8x8xf32, #tpu.memory_space<vmem>>, %arg2: memref<8x256xf32, #tpu.memory_space<vmem>>, %arg3: memref<1x256xf32, #tpu.memory_space<vmem>>, %arg4: memref<256x128xf32, #tpu.memory_space<vmem>>, %arg5: memref<1x128xf32, #tpu.memory_space<vmem>>, %arg6: memref<128x128xf32, #tpu.memory_space<vmem>>, %arg7: memref<1x128xf32, #tpu.memory_space<vmem>>, %arg8: memref<8x4xf32, #tpu.memory_space<vmem>>) attributes {dimension_semantics = [#tpu.dimension_semantics<parallel>], iteration_bounds = array<i64: 1>, scalar_prefetch = 0 : i64, scratch_operands = 0 : i64, tpu.core_type = #tpu.core_type<tc>, window_params = [{transform_indices = @transform_0, window_bounds = array<i64: 8, 8>}, {pipeline_mode = #tpu.pipeline_mode<synchronous>, transform_indices = @transform_1, window_bounds = array<i64: 8, 256>}, {pipeline_mode = #tpu.pipeline_mode<synchronous>, transform_indices = @transform_2, window_bounds = array<i64: 1, 256>}, {pipeline_mode = #tpu.pipeline_mode<synchronous>, transform_indices = @transform_3, window_bounds = array<i64: 256, 128>}, {pipeline_mode = #tpu.pipeline_mode<synchronous>, transform_indices = @transform_4, window_bounds = array<i64: 1, 128>}, {pipeline_mode = #tpu.pipeline_mode<synchronous>, transform_indices = @transform_5, window_bounds = array<i64: 128, 128>}, {pipeline_mode = #tpu.pipeline_mode<synchronous>, transform_indices = @transform_6, window_bounds = array<i64: 1, 128>}, {transform_indices = @transform_7, window_bounds = array<i64: 8, 4>}]} {
    %c0 = arith.constant 0 : index
    %c0_0 = arith.constant 0 : index
    %0 = vector.load %arg1[%c0, %c0_0] : memref<8x8xf32, #tpu.memory_space<vmem>>, vector<8x8xf32>
    %c0_1 = arith.constant 0 : index
    %c0_2 = arith.constant 0 : index
    %1 = vector.load %arg2[%c0_1, %c0_2] : memref<8x256xf32, #tpu.memory_space<vmem>>, vector<8x256xf32>
    %cst = arith.constant dense<0.000000e+00> : vector<8x256xf32>
    %2 = tpu.matmul %0, %1, %cst {dimension_numbers = #tpu.dot_dimension_numbers<[1], [0], [0], [1], [0, 0, 1, 1], [], []>} : vector<8x8xf32>, vector<8x256xf32>, vector<8x256xf32> -> vector<8x256xf32>
    %c0_3 = arith.constant 0 : index
    %c0_4 = arith.constant 0 : index
    %3 = vector.load %arg3[%c0_3, %c0_4] : memref<1x256xf32, #tpu.memory_space<vmem>>, vector<1x256xf32>
    %4 = vector.broadcast %3 : vector<1x256xf32> to vector<8x256xf32>
    %5 = arith.addf %2, %4 : vector<8x256xf32>
    %cst_5 = arith.constant 0.000000e+00 : f32
    %6 = vector.broadcast %cst_5 : f32 to vector<8x256xf32>
    %7 = arith.maximumf %5, %6 : vector<8x256xf32>
    %c0_6 = arith.constant 0 : index
    %c0_7 = arith.constant 0 : index
    %8 = vector.load %arg4[%c0_6, %c0_7] : memref<256x128xf32, #tpu.memory_space<vmem>>, vector<256x128xf32>
    %cst_8 = arith.constant dense<0.000000e+00> : vector<8x128xf32>
    %9 = tpu.matmul %7, %8, %cst_8 {dimension_numbers = #tpu.dot_dimension_numbers<[1], [0], [0], [1], [0, 0, 1, 1], [], []>} : vector<8x256xf32>, vector<256x128xf32>, vector<8x128xf32> -> vector<8x128xf32>
    %c0_9 = arith.constant 0 : index
    %c0_10 = arith.constant 0 : index
    %10 = vector.load %arg5[%c0_9, %c0_10] : memref<1x128xf32, #tpu.memory_space<vmem>>, vector<1x128xf32>
    %11 = vector.broadcast %10 : vector<1x128xf32> to vector<8x128xf32>
    %12 = arith.addf %9, %11 : vector<8x128xf32>
    %cst_11 = arith.constant 0.000000e+00 : f32
    %13 = vector.broadcast %cst_11 : f32 to vector<8x128xf32>
    %14 = arith.maximumf %12, %13 : vector<8x128xf32>
    %c0_12 = arith.constant 0 : index
    %c0_13 = arith.constant 0 : index
    %15 = vector.load %arg6[%c0_12, %c0_13] : memref<128x128xf32, #tpu.memory_space<vmem>>, vector<128x128xf32>
    %cst_14 = arith.constant dense<0.000000e+00> : vector<8x128xf32>
    %16 = tpu.matmul %14, %15, %cst_14 {dimension_numbers = #tpu.dot_dimension_numbers<[1], [0], [0], [1], [0, 0, 1, 1], [], []>} : vector<8x128xf32>, vector<128x128xf32>, vector<8x128xf32> -> vector<8x128xf32>
    %c0_15 = arith.constant 0 : index
    %c0_16 = arith.constant 0 : index
    %17 = vector.load %arg7[%c0_15, %c0_16] : memref<1x128xf32, #tpu.memory_space<vmem>>, vector<1x128xf32>
    %18 = vector.broadcast %17 : vector<1x128xf32> to vector<8x128xf32>
    %19 = arith.addf %16, %18 : vector<8x128xf32>
    %20 = vector.extract_strided_slice %19 {offsets = [0, 0], sizes = [8, 4], strides = [1, 1]} : vector<8x128xf32> to vector<8x4xf32>
    %21 = math.tanh %20 : vector<8x4xf32>
    %c0_17 = arith.constant 0 : index
    %c0_18 = arith.constant 0 : index
    %22 = vector.load %arg8[%c0_17, %c0_18] : memref<8x4xf32, #tpu.memory_space<vmem>>, vector<8x4xf32>
    tpu.vector_store %arg8[%c0_17, %c0_18], %21 {strides = array<i32>} : memref<8x4xf32, #tpu.memory_space<vmem>>, vector<8x4xf32>,
    return
  }
  func.func @transform_0(%arg0: i32) -> (i32, i32) {
    %c0_i32 = arith.constant 0 : i32
    %c0_i32_0 = arith.constant 0 : i32
    return %arg0, %c0_i32 : i32, i32
  }
  func.func @transform_1(%arg0: i32) -> (i32, i32) {
    %c0_i32 = arith.constant 0 : i32
    %c0_i32_0 = arith.constant 0 : i32
    %c0_i32_1 = arith.constant 0 : i32
    return %c0_i32, %c0_i32_0 : i32, i32
  }
  func.func @transform_2(%arg0: i32) -> (i32, i32) {
    %c0_i32 = arith.constant 0 : i32
    %c0_i32_0 = arith.constant 0 : i32
    %c0_i32_1 = arith.constant 0 : i32
    return %c0_i32, %c0_i32_0 : i32, i32
  }
  func.func @transform_3(%arg0: i32) -> (i32, i32) {
    %c0_i32 = arith.constant 0 : i32
    %c0_i32_0 = arith.constant 0 : i32
    %c0_i32_1 = arith.constant 0 : i32
    return %c0_i32, %c0_i32_0 : i32, i32
  }
  func.func @transform_4(%arg0: i32) -> (i32, i32) {
    %c0_i32 = arith.constant 0 : i32
    %c0_i32_0 = arith.constant 0 : i32
    %c0_i32_1 = arith.constant 0 : i32
    return %c0_i32, %c0_i32_0 : i32, i32
  }
  func.func @transform_5(%arg0: i32) -> (i32, i32) {
    %c0_i32 = arith.constant 0 : i32
    %c0_i32_0 = arith.constant 0 : i32
    %c0_i32_1 = arith.constant 0 : i32
    return %c0_i32, %c0_i32_0 : i32, i32
  }
  func.func @transform_6(%arg0: i32) -> (i32, i32) {
    %c0_i32 = arith.constant 0 : i32
    %c0_i32_0 = arith.constant 0 : i32
    %c0_i32_1 = arith.constant 0 : i32
    return %c0_i32, %c0_i32_0 : i32, i32
  }
  func.func @transform_7(%arg0: i32) -> (i32, i32) {
    %c0_i32 = arith.constant 0 : i32
    %c0_i32_0 = arith.constant 0 : i32
    return %arg0, %c0_i32 : i32, i32
  }
}

</mosaic_0001>

<bundles_post_ra>
// kernel: actor_forward.1
= control target key start
LH: loop header
LB: loop body
LE: loop exit
PB: predicated region body
PF: predicated region fallthrough
CT: control target
= control target key end

     0   :  { %12 = vsyncpa [#allocation3], 0  ;;  %s707_s0 = inlined_call_operand.hbm [shape: f32[2,8], index: 0, kind: input, shape index: {}]   ;;  %s708_s1 = inlined_call_operand.hbm [shape: f32[8,256], index: 1, kind: input, shape index: {}]   ;;  %s709_s2 = inlined_call_operand.vmem [shape: f32[1,256], index: 2, kind: input, shape index: {}]   ;;  %s710_s3 = inlined_call_operand.hbm [shape: f32[256,128], index: 3, kind: input, shape index: {}]   ;;  %s711_s4 = inlined_call_operand.vmem [shape: f32[1,128], index: 4, kind: input, shape index: {}]   ;;  %s712_s5 = inlined_call_operand.hbm [shape: f32[128,128], index: 5, kind: input, shape index: {}]   ;;  %s713_s6 = inlined_call_operand.vmem [shape: f32[1,128], index: 6, kind: input, shape index: {}]   ;;  %s714_s7 = inlined_call_operand.hbm [shape: f32[2,4], index: 7, kind: output, shape index: {}]  }
   0x1   :  { %13 = vsyncpa [#allocation6], 0 }
   0x2   :  { %14 = vsyncpa [#allocation9], 0 }
   0x3   :  { %15 = vsyncpa [#allocation4], 0 }
   0x4   :  { %20 = vsyncadd [#allocation3], 96  ;;  %s608_s24 = smov [#allocation5]   ;;  %s609_s26 = smov [#allocation2]  }
   0x5   :  { %s34_s25 = sshll.u32 %s608_s24, 4  ;;  %s21_s27 = sshll.u32 %s609_s26, 4  ;;  %s35_s25 = int_to_ptr.vmem [resolvable:$true] %s34_s25  ;;  %s22_s27 = int_to_ptr.vmem [resolvable:$true] %s21_s27 }
   0x6   :  { %s508_s28 = scalar_lea.vmem %s35_s25, 256  ;;  %p513_p1 = scmp.lt.s32.totalorder %s35_s25, %s35_s25 }
   0x7   :  { %p509_p0 = scmp.ne.s32.totalorder %s35_s25, %s508_s28  ;;  %p514_p2 = scmp.lt.s32.totalorder %s508_s28, %s508_s28 }
   0x9   :  { %p515_p3 = por %p514_p2, %p513_p1 }
   0xb   :  { %p516_p4 = pnand %p515_p3, %p509_p0 }
   0xd   :  { %519 = shalt.err (!%p516_p4)
}
   0xe   :  { %37 = dma.hbm_to_vmem [thread:$0]  %s708_s1, 256, %s35_s25, [#allocation6]  }
   0xf   :  { %s528_s8 = scalar_lea.vmem %s22_s27, 32  ;;  %s532_s9 = scalar_lea.vmem %s22_s27, 128 }
  0x10   :  { %p529_p5 = scmp.ne.s32.totalorder %s22_s27, %s528_s8  ;;  %p533_p6 = scmp.lt.s32.totalorder %s22_s27, %s22_s27 }
  0x11   :  { %p534_p7 = scmp.lt.s32.totalorder %s532_s9, %s528_s8 }
  0x13   :  { %p535_p8 = por %p534_p7, %p533_p6 }
  0x15   :  { %p536_p9 = pnand %p535_p8, %p529_p5 }
  0x17   :  { %539 = shalt.err (!%p536_p9)
}
  0x18   :  { %s610_s10 = smov 32   ;;  %s611_s11 = smov 2  }
  0x19   :  { %27 = dma.hbm_to_vmem [thread:$0]  %s707_s0, 32, %s22_s27, [#allocation3], %s610_s10, %s610_s10, %s611_s11  }
  0x1a   :  { %s612_s14 = smov [#allocation7]  }
  0x1b   :  { %s45_s15 = sshll.u32 %s612_s14, 4  ;;  %s46_s15 = int_to_ptr.vmem [resolvable:$true] %s45_s15 }
  0x1c   :  { %s548_s1 = scalar_lea.vmem %s46_s15, 4096  ;;  %p553_p11 = scmp.lt.s32.totalorder %s46_s15, %s46_s15 }
  0x1d   :  { %p549_p10 = scmp.ne.s32.totalorder %s46_s15, %s548_s1  ;;  %p554_p12 = scmp.lt.s32.totalorder %s548_s1, %s548_s1 }
  0x1f   :  { %p555_p13 = por %p554_p12, %p553_p11 }
  0x21   :  { %p556_p0 = pnand %p555_p13, %p549_p10 }
  0x23   :  { %559 = shalt.err (!%p556_p0)
}
  0x24   :  { %s613_s16 = smov 128   ;;  %s614_s17 = smov 8  }
  0x25   :  { %51 = dma.hbm_to_vmem [thread:$0]  %s710_s3, 4096, %s46_s15, [#allocation6], %s613_s16, %s613_s16, %s614_s17  }
  0x26   :  { %s615_s20 = smov [#allocation8]  }
  0x27   :  { %s59_s21 = sshll.u32 %s615_s20, 4  ;;  %s60_s21 = int_to_ptr.vmem [resolvable:$true] %s59_s21 }
  0x28   :  { %s568_s0 = scalar_lea.vmem %s60_s21, 2048  ;;  %p573_p2 = scmp.lt.s32.totalorder %s60_s21, %s60_s21 }
  0x29   :  { %p569_p1 = scmp.ne.s32.totalorder %s60_s21, %s568_s0  ;;  %p574_p3 = scmp.lt.s32.totalorder %s568_s0, %s568_s0 }
  0x2b   :  { %p575_p4 = por %p574_p3, %p573_p2 }
  0x2d   :  { %p576_p5 = pnand %p575_p4, %p569_p1 }
  0x2f   :  { %579 = shalt.err (!%p576_p5)
}
  0x30   :  { %65 = dma.hbm_to_vmem [thread:$0]  %s712_s5, 2048, %s60_s21, [#allocation9], %s613_s16, %s613_s16, %s614_s17  }
  0x31   :  { %600 = dma.done.wait [#allocation3], 128  }
  0x32   :  { %601 = vsyncadd [#allocation3], 4294967168 }
  0x33   :  { %602 = dma.done.wait [#allocation6], 4352  }
  0x34   :  { %603 = vsyncadd [#allocation6], 4294962944 }
  0x35   :  { %604 = dma.done.wait [#allocation9], 2048  }
  0x36   :  { %605 = vsyncadd [#allocation9], 4294965248  ;;  %v616_v0 = vmov 0.0   ;;  %v82_v1 = vld [vmem:[#allocation5 + $0x8] sm:$0xff]  ;;  %v81_v2 = vld [vmem:[#allocation5] sm:$0xff]  ;;  %vm95_vm0 = vcmask 64512   ;;  %v85_v47 = vlaneseq }
  0x37   :  { %163 = vmatprep.mubr.f32.mxu0 %v616_v0  ;;  %v80_v3 = vld [vmem:[#allocation2] sm:$0xff]  ;;  %129 = vmatprep.subr.mxu0 %v82_v1  ;;  %v203_v4 = vld [vmem:[#allocation7 + $0xf8] sm:$0xff]  ;;  %v202_v6 = vld [vmem:[#allocation7 + $0xf0] sm:$0xff]  ;;  %vm617_vm1 = vmmov 0   ;;  %vm376_vm2 = vcmask 31744  }
  0x38   :  { %v187_v5 = vld [vmem:[#allocation7 + $0x78] sm:$0xff]  ;;  %130 = vmatpush1.msra.mxu0 %v81_v2  ;;  %400 = vmatprep.subr.mxu1 %v203_v4  ;;  %v186_v7 = vld [vmem:[#allocation7 + $0x70] sm:$0xff]  ;;  %v201_v8 = vld [vmem:[#allocation7 + $0xe8] sm:$0xff]  ;;  %v86_v48 = vshrl.u32 %v85_v47, 7 }
  0x39   :  { %397 = vmatmul.mubr.msk.f32.vlgmr.msra.gmra.mxu0 %vm95_vm0, %v80_v3  ;;  %401 = vmatpush3.msra.mxu1 %v187_v5  ;;  %v185_v9 = vld [vmem:[#allocation7 + $0x68] sm:$0xff]  ;;  %v200_v10 = vld [vmem:[#allocation7 + $0xe0] sm:$0xff]  ;;  %v199_v12 = vld [vmem:[#allocation7 + $0xd8] sm:$0xff] }
  0x3a   :  { %402 = vmatprep.subr.mxu1 %v202_v6  ;;  %452 = vmatprep.subr.mxu0 %v616_v0  ;;  %v184_v11 = vld [vmem:[#allocation7 + $0x60] sm:$0xff]  ;;  %v183_v13 = vld [vmem:[#allocation7 + $0x58] sm:$0xff]  ;;  %v198_v14 = vld [vmem:[#allocation7 + $0xd0] sm:$0xff]  ;;  %v87_v49 = vsub.s32 0, %v86_v48  ;;  %v91_v51 = vsub.s32 1, %v86_v48 }
  0x3b   :  { %403 = vmatpush3.msra.mxu1 %v186_v7  ;;  %v182_v15 = vld [vmem:[#allocation7 + $0x50] sm:$0xff]  ;;  %v197_v16 = vld [vmem:[#allocation7 + $0xc8] sm:$0xff]  ;;  %v196_v18 = vld [vmem:[#allocation7 + $0xc0] sm:$0xff]  ;;  %484 = vmatprep.mubr.msk.f32.mxu0 %vm617_vm1, %v616_v0 }
  0x3c   :  { %404 = vmatprep.subr.mxu1 %v201_v8  ;;  %v181_v17 = vld [vmem:[#allocation7 + $0x48] sm:$0xff]  ;;  %v180_v19 = vld [vmem:[#allocation7 + $0x40] sm:$0xff]  ;;  %v195_v20 = vld [vmem:[#allocation7 + $0xb8] sm:$0xff] }
  0x3d   :  { %405 = vmatpush3.msra.mxu1 %v185_v9  ;;  %v179_v21 = vld [vmem:[#allocation7 + $0x38] sm:$0xff]  ;;  %v194_v22 = vld [vmem:[#allocation7 + $0xb0] sm:$0xff]  ;;  %v193_v24 = vld [vmem:[#allocation7 + $0xa8] sm:$0xff] }
  0x3e   :  { %406 = vmatprep.subr.mxu1 %v200_v10  ;;  %v178_v23 = vld [vmem:[#allocation7 + $0x30] sm:$0xff]  ;;  %v177_v25 = vld [vmem:[#allocation7 + $0x28] sm:$0xff]  ;;  %v192_v26 = vld [vmem:[#allocation7 + $0xa0] sm:$0xff] }
  0x3f   :  { %407 = vmatpush3.msra.mxu1 %v184_v11  ;;  %v176_v27 = vld [vmem:[#allocation7 + $0x20] sm:$0xff]  ;;  %v191_v28 = vld [vmem:[#allocation7 + $0x98] sm:$0xff]  ;;  %v190_v30 = vld [vmem:[#allocation7 + $0x90] sm:$0xff] }
  0x40   :  { %408 = vmatprep.subr.mxu1 %v199_v12  ;;  %v175_v29 = vld [vmem:[#allocation7 + $0x18] sm:$0xff]  ;;  %v174_v31 = vld [vmem:[#allocation7 + $0x10] sm:$0xff]  ;;  %v189_v32 = vld [vmem:[#allocation7 + $0x88] sm:$0xff] }
  0x41   :  { %409 = vmatpush3.msra.mxu1 %v183_v13  ;;  %v173_v33 = vld [vmem:[#allocation7 + $0x8] sm:$0xff]  ;;  %v188_v34 = vld [vmem:[#allocation7 + $0x80] sm:$0xff]  ;;  %v297_v36 = vld [vmem:[#allocation8 + $0x78] sm:$0xff] }
  0x42   :  { %410 = vmatprep.subr.mxu1 %v198_v14  ;;  %v172_v35 = vld [vmem:[#allocation7] sm:$0xff]  ;;  %v296_v37 = vld [vmem:[#allocation8 + $0x70] sm:$0xff]  ;;  %453 = vmatpush3.msra.mxu0 %v297_v36  ;;  %v295_v38 = vld [vmem:[#allocation8 + $0x68] sm:$0xff] }
  0x43   :  { %411 = vmatpush3.msra.mxu1 %v182_v15  ;;  %454 = vmatprep.subr.mxu0 %v616_v0  ;;  %v294_v39 = vld [vmem:[#allocation8 + $0x60] sm:$0xff]  ;;  %v293_v40 = vld [vmem:[#allocation8 + $0x58] sm:$0xff]  ;;  %v292_v41 = vld [vmem:[#allocation8 + $0x50] sm:$0xff] }
  0x44   :  { %412 = vmatprep.subr.mxu1 %v197_v16  ;;  %455 = vmatpush3.msra.mxu0 %v296_v37  ;;  %v291_v42 = vld [vmem:[#allocation8 + $0x48] sm:$0xff]  ;;  %v290_v43 = vld [vmem:[#allocation8 + $0x40] sm:$0xff]  ;;  %v289_v44 = vld [vmem:[#allocation8 + $0x38] sm:$0xff] }
  0x45   :  { %413 = vmatpush3.msra.mxu1 %v181_v17  ;;  %456 = vmatprep.subr.mxu0 %v616_v0  ;;  %v288_v45 = vld [vmem:[#allocation8 + $0x30] sm:$0xff]  ;;  %v287_v46 = vld [vmem:[#allocation8 + $0x28] sm:$0xff]  ;;  %v286_v60 = vld [vmem:[#allocation8 + $0x20] sm:$0xff] }
  0x46   :  { %414 = vmatprep.subr.mxu1 %v196_v18  ;;  %457 = vmatpush3.msra.mxu0 %v295_v38  ;;  %v83_v50 = vld [vmem:[%s709_s2] sm:$0x3]  ;;  %v285_v61 = vld [vmem:[#allocation8 + $0x18] sm:$0xff]  ;;  %v284_v62 = vld [vmem:[#allocation8 + $0x10] sm:$0xff] }
  0x47   :  { %415 = vmatpush3.msra.mxu1 %v180_v19  ;;  %458 = vmatprep.subr.mxu0 %v616_v0  ;;  %v88_v52 = vrot.slane %v83_v50, %v87_v49  ;;  %v92_v53 = vrot.slane %v83_v50, %v91_v51  ;;  %v283_v63 = vld [vmem:[#allocation8 + $0x8] sm:$0xff]  ;;  %v282_v1 = vld [vmem:[#allocation8] sm:$0xff] }
  0x48   :  { %416 = vmatprep.subr.mxu1 %v195_v20  ;;  %459 = vmatpush3.msra.mxu0 %v294_v39  ;;  %v398_v3 = vld [vmem:[%s711_s4] ss:$0 sm:$0xff] }
  0x49   :  { %417 = vmatpush3.msra.mxu1 %v179_v21  ;;  %460 = vmatprep.subr.mxu0 %v616_v0  ;;  %v399_v8 = vld [vmem:[%s713_s6] ss:$0 sm:$0xff] }
  0x4a   :  { %418 = vmatprep.subr.mxu1 %v194_v22  ;;  %461 = vmatpush3.msra.mxu0 %v293_v40 }
  0x4b   :  { %419 = vmatpush3.msra.mxu1 %v178_v23  ;;  %462 = vmatprep.subr.mxu0 %v616_v0 }
  0x4c   :  { %420 = vmatprep.subr.mxu1 %v193_v24  ;;  %463 = vmatpush3.msra.mxu0 %v292_v41 }
  0x4d   :  { %421 = vmatpush3.msra.mxu1 %v177_v25  ;;  %464 = vmatprep.subr.mxu0 %v616_v0 }
  0x4e   :  { %422 = vmatprep.subr.mxu1 %v192_v26  ;;  %465 = vmatpush3.msra.mxu0 %v291_v42 }
  0x4f   :  { %423 = vmatpush3.msra.mxu1 %v176_v27  ;;  %466 = vmatprep.subr.mxu0 %v616_v0 }
  0x50   :  { %424 = vmatprep.subr.mxu1 %v191_v28  ;;  %467 = vmatpush3.msra.mxu0 %v290_v43 }
  0x51   :  { %425 = vmatpush3.msra.mxu1 %v175_v29  ;;  %468 = vmatprep.subr.mxu0 %v616_v0 }
  0x52   :  { %426 = vmatprep.subr.mxu1 %v190_v30  ;;  %469 = vmatpush3.msra.mxu0 %v289_v44 }
  0x53   :  { %427 = vmatpush3.msra.mxu1 %v174_v31  ;;  %470 = vmatprep.subr.mxu0 %v616_v0 }
  0x54   :  { %428 = vmatprep.subr.mxu1 %v189_v32  ;;  %471 = vmatpush3.msra.mxu0 %v288_v45 }
  0x55   :  { %429 = vmatpush3.msra.mxu1 %v173_v33  ;;  %472 = vmatprep.subr.mxu0 %v616_v0 }
  0x56   :  { %430 = vmatprep.subr.mxu1 %v188_v34  ;;  %473 = vmatpush3.msra.mxu0 %v287_v46 }
  0x57   :  { %431 = vmatpush3.msra.mxu1 %v172_v35  ;;  %474 = vmatprep.subr.mxu0 %v616_v0 }
  0x58   :  { %475 = vmatpush3.msra.mxu0 %v286_v60 }
  0x59   :  { %476 = vmatprep.subr.mxu0 %v616_v0 }
  0x5a   :  { %477 = vmatpush3.msra.mxu0 %v285_v61 }
  0x5b   :  { %478 = vmatprep.subr.mxu0 %v616_v0 }
  0x5c   :  { %479 = vmatpush3.msra.mxu0 %v284_v62 }
  0x5d   :  { %480 = vmatprep.subr.mxu0 %v616_v0 }
  0x5e   :  { %481 = vmatpush3.msra.mxu0 %v283_v63 }
  0x5f   :  { %482 = vmatprep.subr.mxu0 %v616_v0 }
  0x60   :  { %483 = vmatpush3.msra.mxu0 %v282_v1 }
  0xf9   :  { %v165_v54 = vpop.f32.mrf.mxu0 }
  0xfa   :  { %v166_v55 = vadd.f32 %v165_v54, %v88_v52 }
  0xfb   :  { %v167_v56 = vpop.f32.mrf.mxu0 }
  0xfc   :  { %v168_v57 = vadd.f32 %v167_v56, %v92_v53  ;;  %v170_v59 = vmax.f32 %v166_v55, 0.0 }
  0xfe   :  { %v171_v58 = vmax.f32 %v168_v57, 0.0 }
 0x100   :  { %275 = vmatprep.mubr.f32.mxu1 %v171_v58 }
 0x101   :  { %276 = vmatmul.mubr.f32.vlgmr.msra.gmra.mxu1 %v170_v59 }
 0x1c1   :  { %v432_v2 = vpop.f32.mrf.mxu1 }
 0x1c3   :  { %v433_v4 = vpop.f32.mrf.mxu1 }
 0x1c4   :  { %v434_v5 = vadd.f32 %v433_v4, %v432_v2 }
 0x1c6   :  { %v278_v6 = vadd.f32 %v434_v5, %v398_v3 }
 0x1c8   :  { %v281_v7 = vmax.f32 %v278_v6, 0.0 }
 0x1ca   :  { %485 = vmatmul.mubr.f32.vlgmr.msra.gmra.mxu0 %v281_v7 }
 0x28a   :  { %v371_v9 = vpop.f32.mrf.mxu0 }
 0x28b   :  { %v372_v10 = vadd.f32 %v399_v8, %v371_v9 }
 0x28c   :  { %v486_v11 = vpop.f32.mrf.mxu0 }
 0x28d   :  { %498 = vtanh.f32 %v372_v10 }
 0x29a   :  { %v499_v0 = vpop.eup %498 }
 0x29b   :  { %377 = vst.msk [vmem:[#allocation10] sm:$0xff] %vm376_vm2, %v499_v0 }
 0x29c   :  { %382 = vsyncadd [#allocation4], 96  ;;  %s618_s27 = smov [#allocation10]  }
 0x29d   :  { %s383_s28 = sshll.u32 %s618_s27, 4  ;;  %s384_s28 = int_to_ptr.vmem [resolvable:$true] %s383_s28 }
 0x29e   :  { %s580_s4 = scalar_lea.vmem %s384_s28, 32  ;;  %s584_s29 = scalar_lea.vmem %s384_s28, 128 }
 0x29f   :  { %p581_p6 = scmp.ne.s32.totalorder %s384_s28, %s580_s4  ;;  %p585_p7 = scmp.lt.s32.totalorder %s384_s28, %s384_s28 }
 0x2a0   :  { %p586_p8 = scmp.lt.s32.totalorder %s584_s29, %s580_s4 }
 0x2a2   :  { %p587_p9 = por %p586_p8, %p585_p7 }
 0x2a4   :  { %p588_p10 = pnand %p587_p9, %p581_p6 }
 0x2a6   :  { %591 = shalt.err (!%p588_p10)
}
 0x2a7   :  { %389 = dma.vmem_to_hbm [thread:$0]  %s384_s28, 32, %s714_s7, [#allocation4], %s610_s10, %s610_s10, %s611_s11  }
 0x2a8   :  { %606 = dma.done.wait [#allocation4], 128  }
 0x2a9   :  { %607 = vsyncadd [#allocation4], 4294967168 }
 0x2aa   :  { %393 = vsyncpa [#allocation3], 1 }
 0x2ab   :  { %394 = vsyncpa [#allocation6], 1 }
 0x2ac   :  { %395 = vsyncpa [#allocation9], 1 }
 0x2ad   :  { %396 = vsyncpa [#allocation4], 1 }

</bundles_post_ra>
